<compile_context>
chip_gen: v7x
topology: tpu7x:2x2x1
jax: 0.10.0
libtpu: 0.0.40
codegen_flags: <defaults>
</compile_context>

<pallas_src>
import functools

import jax
import jax.numpy as jnp
from jax import lax
from jax.experimental import pallas as pl
from jax.experimental.pallas import tpu as pltpu

F32_MAX = float(jnp.finfo(jnp.float32).max)
NEG_FILL = -F32_MAX            # same fill as torch masked_fill_(-get_max_tensor(x))
VMEM_LIMIT = 32 * 1024 * 1024


def _pick_bt(B, per_batch_elems, *, target_elems=262144):
    """Batch rows per grid step: aim for ~1 MiB f32 logits blocks, keep >=2 steps."""
    bt = max(1, min(B, target_elems // max(1, per_batch_elems)))
    if B >= 2:
        bt = min(bt, max(1, B // 2))      # keep the parallel grid axis extent >= 2
    while B % bt != 0:
        bt -= 1
    return bt


# --------------------------- masked CE (class on sublanes) ---------------------------

def _ce_clsub_tgt_kernel(logits_ref, tgt_ref, mask_ref, out_ref, *, n_tok, tile_n):
    """sum_n CE(logits[:, :, n], tgt[:, n]) * mask[:, n] per batch row.

    Blocks: logits (bt, C, TN) class-sublane/token-lane, tgt (bt, 1, TN) int32,
    mask (bt, 1, TN).  Output (bt, 1, 1) revisited over the token-tile axis.
    """
    t = pl.program_id(1)

    @pl.when(t == 0)
    def _init():
        out_ref[...] = jnp.zeros_like(out_ref)

    logits = logits_ref[...].astype(jnp.float32)            # (bt, C, TN)
    tgt = tgt_ref[...]                                       # (bt, 1, TN) int32
    mask = mask_ref[...].astype(jnp.float32)                 # (bt, 1, TN)

    if n_tok % tile_n != 0:                                  # partial last token tile
        tok = t * tile_n + lax.broadcasted_iota(jnp.int32, mask.shape, 2)
        ok = tok < n_tok
        mask = jnp.where(ok, mask, 0.0)
        logits = jnp.where(ok, logits, 0.0)                  # keep exp/log clean

    cls = lax.broadcasted_iota(jnp.int32, logits.shape, 1)
    m = jnp.max(logits, axis=1, keepdims=True)
    lse = m + jnp.log(jnp.sum(jnp.exp(logits - m), axis=1, keepdims=True))
    picked = jnp.sum(jnp.where(cls == tgt, logits, 0.0), axis=1, keepdims=True)
    ce = lse - picked                                        # (bt, 1, TN)

    ce = jnp.where(mask != 0.0, ce, 0.0)                     # inf/NaN-safe masking
    out_ref[...] += jnp.sum(ce * mask, axis=2, keepdims=True)


def masked_ce_cls_first(logits_cf, tgt, mask, *, max_tile=8192):
    """logits_cf (B, C, N) class-first; tgt (B, N); mask (B, N) -> per-batch sums (B,)."""
    B, C, N = logits_cf.shape
    tn = N if N <= max_tile else max_tile                    # max_tile is 128-aligned
    bt = _pick_bt(B, min(N, tn) * C)
    grid = (B // bt, pl.cdiv(N, tn))
    out = pl.pallas_call(
        functools.partial(_ce_clsub_tgt_kernel, n_tok=N, tile_n=tn),
        out_shape=jax.ShapeDtypeStruct((B, 1, 1), jnp.float32),
        grid=grid,
        in_specs=[
            pl.BlockSpec((bt, C, tn), lambda b, t: (b, 0, t)),
            pl.BlockSpec((bt, 1, tn), lambda b, t: (b, 0, t)),
            pl.BlockSpec((bt, 1, tn), lambda b, t: (b, 0, t)),
        ],
        out_specs=pl.BlockSpec((bt, 1, 1), lambda b, t: (b, 0, 0)),
        compiler_params=pltpu.CompilerParams(
            dimension_semantics=("parallel", "arbitrary"),
            vmem_limit_bytes=VMEM_LIMIT),
    )(logits_cf, tgt.astype(jnp.int32).reshape(B, 1, N), mask.reshape(B, 1, N))
    return out[:, 0, 0]


def _ce_clsub_argmax_kernel(logits_ref, lx_ref, mask_ref, out_ref, *, n_tok, tile_n):
    """Same as above but target = argmax over class of a second (bt, C, TN) tensor
    (first max index, matching torch.argmax tie-breaking)."""
    t = pl.program_id(1)

    @pl.when(t == 0)
    def _init():
        out_ref[...] = jnp.zeros_like(out_ref)

    logits = logits_ref[...].astype(jnp.float32)             # (bt, C, TN)
    lx = lx_ref[...].astype(jnp.float32)                     # (bt, C, TN)
    mask = mask_ref[...].astype(jnp.float32)                 # (bt, 1, TN)

    if n_tok % tile_n != 0:
        tok = t * tile_n + lax.broadcasted_iota(jnp.int32, mask.shape, 2)
        ok = tok < n_tok
        mask = jnp.where(ok, mask, 0.0)
        logits = jnp.where(ok, logits, 0.0)
        lx = jnp.where(ok, lx, 0.0)

    C = logits.shape[1]
    cls = lax.broadcasted_iota(jnp.int32, logits.shape, 1)
    lmax = jnp.max(lx, axis=1, keepdims=True)
    tgt = jnp.min(jnp.where(lx == lmax, cls, C), axis=1, keepdims=True)  # first argmax

    m = jnp.max(logits, axis=1, keepdims=True)
    lse = m + jnp.log(jnp.sum(jnp.exp(logits - m), axis=1, keepdims=True))
    picked = jnp.sum(jnp.where(cls == tgt, logits, 0.0), axis=1, keepdims=True)
    ce = lse - picked

    ce = jnp.where(mask != 0.0, ce, 0.0)
    out_ref[...] += jnp.sum(ce * mask, axis=2, keepdims=True)


def masked_ce_argmax_target(logits_cf, lx_cf, mask, *, max_tile=8192):
    """logits_cf / lx_cf (B, C, N) class-first; mask (B, N) -> per-batch sums (B,)."""
    B, C, N = logits_cf.shape
    tn = N if N <= max_tile else max_tile
    bt = _pick_bt(B, min(N, tn) * C)
    grid = (B // bt, pl.cdiv(N, tn))
    out = pl.pallas_call(
        functools.partial(_ce_clsub_argmax_kernel, n_tok=N, tile_n=tn),
        out_shape=jax.ShapeDtypeStruct((B, 1, 1), jnp.float32),
        grid=grid,
        in_specs=[
            pl.BlockSpec((bt, C, tn), lambda b, t: (b, 0, t)),
            pl.BlockSpec((bt, C, tn), lambda b, t: (b, 0, t)),
            pl.BlockSpec((bt, 1, tn), lambda b, t: (b, 0, t)),
        ],
        out_specs=pl.BlockSpec((bt, 1, 1), lambda b, t: (b, 0, 0)),
        compiler_params=pltpu.CompilerParams(
            dimension_semantics=("parallel", "arbitrary"),
            vmem_limit_bytes=VMEM_LIMIT),
    )(logits_cf, lx_cf, mask.reshape(B, 1, N))
    return out[:, 0, 0]


# ------------------------------- edge_scaf (fused bridge) -------------------------------

def _edge_scaf_kernel(pred_ref, adj_ref, mask_ref, out_ref, *, thresh, neg):
    """CE over class = i (sublane) per column j, with bridge_posi computed in-kernel."""
    logits = pred_ref[...].astype(jnp.float32)               # (bt, N, N)  class=i, token=j
    adj = adj_ref[...]                                        # (bt, N, N) int32
    mask = mask_ref[...].astype(jnp.float32)                  # (bt, 1, N)

    N = logits.shape[1]
    ri = lax.broadcasted_iota(jnp.int32, logits.shape, 1)     # i
    ci = lax.broadcasted_iota(jnp.int32, logits.shape, 2)     # j

    # bridge_posi[b, j] = argmax_i ((adj<thresh) & (i<j)) -> first qualifying i, else 0
    ind = jnp.logical_and(adj < thresh, ri < ci)
    first_i = jnp.min(jnp.where(ind, ri, N), axis=1, keepdims=True)   # (bt, 1, N)
    bridge = jnp.where(first_i >= N, 0, first_i)

    logits = jnp.where(ri >= ci, neg, logits)                 # fused tril(0) masked_fill_

    m = jnp.max(logits, axis=1, keepdims=True)
    lse = m + jnp.log(jnp.sum(jnp.exp(logits - m), axis=1, keepdims=True))
    picked = jnp.sum(jnp.where(ri == bridge, logits, 0.0), axis=1, keepdims=True)
    ce = lse - picked                                         # (bt, 1, N)

    jpos = lax.broadcasted_iota(jnp.int32, mask.shape, 2)
    w = jnp.where(jpos >= 2, mask, 0.0)                       # loss[:, 2:] * mask[:, 2:]
    ce = jnp.where(w != 0.0, ce, 0.0)
    out_ref[...] = jnp.sum(ce * w, axis=2, keepdims=True)


def edge_scaf_ce_per_batch(edge_scaf_pred, adj, pooling_mask, thresh):
    B, N, _ = edge_scaf_pred.shape
    bt = _pick_bt(B, N * N)
    out = pl.pallas_call(
        functools.partial(_edge_scaf_kernel, thresh=int(thresh), neg=NEG_FILL),
        out_shape=jax.ShapeDtypeStruct((B, 1, 1), jnp.float32),
        grid=(B // bt,),
        in_specs=[
            pl.BlockSpec((bt, N, N), lambda b: (b, 0, 0)),
            pl.BlockSpec((bt, N, N), lambda b: (b, 0, 0)),
            pl.BlockSpec((bt, 1, N), lambda b: (b, 0, 0)),
        ],
        out_specs=pl.BlockSpec((bt, 1, 1), lambda b: (b, 0, 0)),
        compiler_params=pltpu.CompilerParams(
            dimension_semantics=("parallel",), vmem_limit_bytes=VMEM_LIMIT),
    )(edge_scaf_pred, adj, pooling_mask.reshape(B, 1, N))
    return out[:, 0, 0]


# ------------------------------- edge_bond (row-tiled) -------------------------------

def _edge_bond_kernel(logits_ref, allow_ref, adj_ref, out_ref,
                      *, thresh, tol, neg, n_rows, tile_r):
    """Fused allow-mask fill + bridge (triu & adj<thresh) weighting + 'noinf' CE sum."""
    r = pl.program_id(1)

    @pl.when(r == 0)
    def _init():
        out_ref[...] = jnp.zeros_like(out_ref)

    logits = logits_ref[...].astype(jnp.float32)              # (1, TR, N, Cb)
    allow = allow_ref[...]                                     # (1, TR, N, Cb) any int dtype
    adj = adj_ref[...]                                         # (1, TR, N, 1) int32

    cb = logits.shape[-1]
    row = r * tile_r + lax.broadcasted_iota(jnp.int32, adj.shape, 1)   # global i
    col = lax.broadcasted_iota(jnp.int32, adj.shape, 2)                # j

    w = jnp.logical_and(adj < thresh, col > row)               # triu(diag=1) bridge posi
    if n_rows % tile_r != 0:                                   # partial last row tile
        in_range = row < n_rows
        w = jnp.logical_and(w, in_range)
        logits = jnp.where(in_range, logits, 0.0)

    logits = jnp.where(allow != 0, logits, neg)                # fused masked_fill_

    m = jnp.max(logits, axis=-1, keepdims=True)
    lse = m + jnp.log(jnp.sum(jnp.exp(logits - m), axis=-1, keepdims=True))
    tgt = jnp.clip(adj, 0, cb - 1)
    cls = lax.broadcasted_iota(jnp.int32, logits.shape, 3)
    picked = jnp.sum(jnp.where(cls == tgt, logits, 0.0), axis=-1, keepdims=True)
    ce = lse - picked                                          # (1, TR, N, 1)

    keep = jnp.logical_and(ce > -tol, ce < tol)                # torch tol=100 'noinf' filter
    ce = jnp.where(jnp.logical_and(keep, w), ce, 0.0)          # where, never inf*0

    part = jnp.sum(jnp.sum(ce, axis=2, keepdims=True), axis=1, keepdims=True)
    out_ref[...] += part


def edge_bond_ce_per_batch(edge_bond_pred, edge_allow_mask, adj, thresh,
                           *, tol=100.0, target_tokens=4096):
    B, N, _, Cb = edge_bond_pred.shape
    if N * N <= target_tokens:
        tr = N
    else:
        tr = max(8, min(N, (target_tokens // N) // 8 * 8))     # 8-aligned row tiles
    adj4 = adj.astype(jnp.int32).reshape(B, N, N, 1)
    grid = (B, pl.cdiv(N, tr))
    out = pl.pallas_call(
        functools.partial(_edge_bond_kernel, thresh=int(thresh), tol=float(tol),
                          neg=NEG_FILL, n_rows=N, tile_r=tr),
        out_shape=jax.ShapeDtypeStruct((B, 1, 1, 1), jnp.float32),
        grid=grid,
        in_specs=[
            pl.BlockSpec((1, tr, N, Cb), lambda b, r: (b, r, 0, 0)),
            pl.BlockSpec((1, tr, N, Cb), lambda b, r: (b, r, 0, 0)),
            pl.BlockSpec((1, tr, N, 1), lambda b, r: (b, r, 0, 0)),
        ],
        out_specs=pl.BlockSpec((1, 1, 1, 1), lambda b, r: (b, 0, 0, 0)),
        compiler_params=pltpu.CompilerParams(
            dimension_semantics=("parallel", "arbitrary"),
            vmem_limit_bytes=VMEM_LIMIT),
    )(edge_bond_pred, edge_allow_mask, adj4)
    return out[:, 0, 0, 0]


# --------------------- fused aux losses (KL + CL + norm + fp BCE/acc) ---------------------

def _aux_kernel(mu_ref, lv_ref, cl1_ref, cl2_ref, fpe_ref, fp_ref,
                kl_ref, np1_ref, np2_ref, cl_ref, bce_ref, acc_ref, *, T, neg):
    mu = mu_ref[...].astype(jnp.float32)
    lv = lv_ref[...].astype(jnp.float32)
    kld = jnp.sum(-0.5 * (1.0 + lv - mu * mu - jnp.exp(lv)), axis=1, keepdims=True)
    kl_ref[...] = jnp.mean(kld, axis=0, keepdims=True)

    c1 = cl1_ref[...].astype(jnp.float32)                      # (Bh, H)
    c2 = cl2_ref[...].astype(jnp.float32)

    def norm_pen(x):
        n = jnp.sqrt(jnp.sum(x * x, axis=1, keepdims=True))
        return jnp.mean((n - 1.0) ** 2, axis=0, keepdims=True)

    np1_ref[...] = norm_pen(c1)
    np2_ref[...] = norm_pen(c2)

    def normalize(x):
        n = jnp.sqrt(jnp.sum(x * x, axis=1, keepdims=True))
        return x / jnp.maximum(n, 1e-8)

    x1 = normalize(c1)
    x2 = normalize(c2)

    def sim(a, b):
        return lax.dot_general(a, b, (((1,), (1,)), ((), ())),
                               preferred_element_type=jnp.float32) / T

    s11 = sim(x1, x1); s12 = sim(x1, x2)
    s21 = sim(x2, x1); s22 = sim(x2, x2)
    Bh = c1.shape[0]
    ri = lax.broadcasted_iota(jnp.int32, (Bh, Bh), 0)
    ci = lax.broadcasted_iota(jnp.int32, (Bh, Bh), 1)
    diag = ri == ci
    s11 = jnp.where(diag, neg, s11)                            # mask self-similarity
    s22 = jnp.where(diag, neg, s22)

    # rows from cl1: row = [s11 | s12], label = row + Bh -> picked = diag(s12)
    m1 = jnp.maximum(jnp.max(s11, axis=1, keepdims=True), jnp.max(s12, axis=1, keepdims=True))
    lse1 = m1 + jnp.log(jnp.sum(jnp.exp(s11 - m1), axis=1, keepdims=True)
                        + jnp.sum(jnp.exp(s12 - m1), axis=1, keepdims=True))
    p1 = jnp.sum(jnp.where(diag, s12, 0.0), axis=1, keepdims=True)
    # rows from cl2: row = [s21 | s22], label = row - Bh -> picked = diag(s21)
    m2 = jnp.maximum(jnp.max(s21, axis=1, keepdims=True), jnp.max(s22, axis=1, keepdims=True))
    lse2 = m2 + jnp.log(jnp.sum(jnp.exp(s21 - m2), axis=1, keepdims=True)
                        + jnp.sum(jnp.exp(s22 - m2), axis=1, keepdims=True))
    p2 = jnp.sum(jnp.where(diag, s21, 0.0), axis=1, keepdims=True)
    cl_sum = (jnp.sum(lse1 - p1, axis=0, keepdims=True)
              + jnp.sum(lse2 - p2, axis=0, keepdims=True))
    cl_ref[...] = cl_sum / (2.0 * Bh)

    x = fpe_ref[...].astype(jnp.float32)
    y = fp_ref[...].astype(jnp.float32)
    bce = jnp.maximum(x, 0.0) - x * y + jnp.log1p(jnp.exp(-jnp.abs(x)))
    bce_ref[...] = jnp.mean(jnp.mean(bce, axis=1, keepdims=True), axis=0, keepdims=True)
    pred = (x > 0.0).astype(jnp.float32)                       # sigmoid(x) > 0.5 <=> x > 0
    acc = (pred == y).astype(jnp.float32)
    acc_ref[...] = jnp.mean(jnp.mean(acc, axis=1, keepdims=True), axis=0, keepdims=True)


def aux_losses(noise_mean, noise_logvar, cl1, cl2, fp_embed, fp, *, T):
    ins = (noise_mean, noise_logvar, cl1, cl2, fp_embed, fp)
    outs = pl.pallas_call(
        functools.partial(_aux_kernel, T=float(T), neg=NEG_FILL),
        out_shape=tuple(jax.ShapeDtypeStruct((1, 1), jnp.float32) for _ in range(6)),
        in_specs=[pl.BlockSpec(a.shape, lambda: (0, 0)) for a in ins],
        out_specs=tuple(pl.BlockSpec((1, 1), lambda: (0, 0)) for _ in range(6)),
        compiler_params=pltpu.CompilerParams(vmem_limit_bytes=VMEM_LIMIT),
    )(*ins)
    return tuple(o[0, 0] for o in outs)     # kl, np1, np2, cl, fp_bce, fp_acc


def _kl_kernel(mu_ref, lv_ref, out_ref):
    mu = mu_ref[...].astype(jnp.float32)
    lv = lv_ref[...].astype(jnp.float32)
    kld = jnp.sum(-0.5 * (1.0 + lv - mu * mu - jnp.exp(lv)), axis=1, keepdims=True)
    out_ref[...] = jnp.mean(kld, axis=0, keepdims=True)


def kl_loss_mean(mu, logvar):
    out = pl.pallas_call(
        _kl_kernel,
        out_shape=jax.ShapeDtypeStruct((1, 1), jnp.float32),
        in_specs=[pl.BlockSpec(mu.shape, lambda: (0, 0)),
                  pl.BlockSpec(logvar.shape, lambda: (0, 0))],
        out_specs=pl.BlockSpec((1, 1), lambda: (0, 0)),
    )(mu, logvar)
    return out[0, 0]


# ------------------------------------ forward glue ------------------------------------

def get_loss_weight(loss_weight, k, epoch=-1):
    w = loss_weight[k]
    if isinstance(w, (list, tuple)):
        if epoch >= len(w) or epoch == -1:
            return w[-1]
        return w[epoch]
    return w


def scaf_loss_forward(dic_data, loss_weight, loss_config, model_config, epoch=1000):
    dic_loss = {}
    dic_log = {}

    # ------------------------------ scaf loss ------------------------------
    pooling_mask = dic_data['pooling_mask'].astype(jnp.float32)          # (B, N)
    B, N = pooling_mask.shape
    x_mask = jnp.concatenate([pooling_mask, jnp.ones((B, 1), jnp.float32)], axis=-1)
    # (N+1, B, C) -> (B, C, N+1): class on sublanes, tokens on lanes (lane-dense kernel)
    x_scaf_pred_cf = jnp.transpose(dic_data['x_scaf_pred'], (1, 2, 0))
    per_b = masked_ce_cls_first(x_scaf_pred_cf,
                                dic_data['scaf_idx_bfs_with_end_token'], x_mask)
    dic_loss['x_scaf_pred_loss'] = jnp.mean(per_b)

    adj = dic_data['reordered_scaf_sparse_adj_bfs'].astype(jnp.int32)    # (B, N, N)
    thresh = model_config['ppl_force_max_atom_with_ring'] ** 2
    per_b = edge_scaf_ce_per_batch(dic_data['edge_scaf_pred'], adj, pooling_mask, thresh)
    dic_loss['edge_scaf_pred_loss'] = jnp.mean(per_b)

    # ------------------------------- aa loss -------------------------------
    # argmax(l_x_init, -1) target is computed in-kernel; tiny class-first transposes
    x_aa_pred_cf = jnp.transpose(dic_data['x_aa_pred'], (0, 2, 1))
    l_x_init_cf = jnp.transpose(dic_data['l_x_init'], (0, 2, 1))
    per_b = masked_ce_argmax_target(x_aa_pred_cf, l_x_init_cf,
                                    dic_data['x_aa_masked_posi'])
    dic_loss['x_aa_pred_loss'] = jnp.mean(per_b)

    per_b = edge_bond_ce_per_batch(dic_data['edge_bond_pred'],
                                   dic_data['edge_allow_mask'], adj, thresh, tol=100.0)
    dic_loss['edge_bond_pred_loss'] = jnp.mean(per_b)

    # -------------------------- kl + mix (aux) losses ----------------------
    if model_config['with_aux']:
        kl, np1, np2, cl, fp_bce, fp_acc = aux_losses(
            dic_data['noise_mean'], dic_data['noise_logvar'],
            dic_data['cl_embed_mask_1'], dic_data['cl_embed_mask_2'],
            dic_data['fp_embed'], dic_data['fp'], T=loss_config['cl_T'])
        dic_loss['kl_loss'] = kl
        dic_loss['cl_loss'] = cl
        dic_loss['cl_embed_1_norm_penalty'] = np1
        dic_loss['cl_embed_2_norm_penalty'] = np2
        dic_loss['fp_loss'] = fp_bce
        dic_log['fp_acc'] = fp_acc
        # TODO(synk): cl_embed_*_pool FIFO update via accelerator.gather only exists
        #             when n_cl_pool > 0 in the original training setup; skipped here.
    else:
        dic_loss['kl_loss'] = kl_loss_mean(dic_data['noise_mean'],
                                           dic_data['noise_logvar'])

    # ----------------------------- total loss ------------------------------
    main_loss = jnp.float32(0.0)
    for k in dic_loss.keys():
        main_loss = main_loss + dic_loss[k] * get_loss_weight(loss_weight, k, epoch=epoch)
    grad_loss = (main_loss,)

    # load_dic_log: mirror losses into the log dict; keep device scalars (no .item()
    # host sync per step — defer host conversion to the logging cadence).
    for k, v in dic_loss.items():
        dic_log[k] = v
    return grad_loss, dic_log


# --------------------------------------- driver ----------------------------------------

if __name__ == "__main__":
    key = jax.random.PRNGKey(0)
    ks = jax.random.split(key, 16)

    B, N = 2, 8            # batch, scaffold positions (N+1 with end token)
    C_scaf = 16            # scaffold vocab (incl. end token)
    Na, Ca = 12, 8         # atoms, atom classes
    max_ring_atom = 4      # ppl_force_max_atom_with_ring -> thresh = 16
    Cb = 16                # bond classes (== thresh so bridge targets are valid)
    D_noise = 32
    H_cl = 16
    F_fp = 32

    model_config = {'ppl_force_max_atom_with_ring': max_ring_atom, 'with_aux': True,
                    'cl_hidden': H_cl}
    loss_config = {'cl_T': 0.1, 'n_cl_pool': 0}
    loss_weight = {
        'x_scaf_pred_loss': 1.0,
        'edge_scaf_pred_loss': 1.0,
        'x_aa_pred_loss': 1.0,
        'edge_bond_pred_loss': 1.0,
        'kl_loss': [0.0, 1e-3, 1e-2],
        'cl_loss': 1.0,
        'cl_embed_1_norm_penalty': 0.1,
        'cl_embed_2_norm_penalty': 0.1,
        'fp_loss': 1.0,
    }

    pooling_mask = jnp.ones((B, N), jnp.float32).at[1, 6:].set(0.0)
    adj = jax.random.randint(ks[0], (B, N, N), 0, 40, dtype=jnp.int32)
    adj = adj.at[:, 0, :].set(1)   # ensure every column has a bridge (< thresh) in row 0

    # compact (int8) allow mask — consumed without up-conversion by the kernel
    edge_allow_mask = (jax.random.uniform(ks[1], (B, N, N, Cb)) > 0.2).astype(jnp.int8)
    edge_allow_mask = edge_allow_mask.at[..., 0].set(1)     # >=1 class always allowed

    dic_data = {
        'pooling_mask': pooling_mask,
        'x_scaf_pred': jax.random.normal(ks[2], (N + 1, B, C_scaf), jnp.float32),
        'scaf_idx_bfs_with_end_token':
            jax.random.randint(ks[3], (B, N + 1), 0, C_scaf, dtype=jnp.int32),
        'reordered_scaf_sparse_adj_bfs': adj,
        'edge_scaf_pred': jax.random.normal(ks[4], (B, N, N), jnp.float32),
        'x_aa_pred': jax.random.normal(ks[5], (B, Na, Ca), jnp.float32),
        'l_x_init': jax.random.normal(ks[6], (B, Na, Ca), jnp.float32),
        'x_aa_masked_posi':
            (jax.random.uniform(ks[7], (B, Na)) < 0.5).astype(jnp.float32),
        'edge_bond_pred': jax.random.normal(ks[8], (B, N, N, Cb), jnp.float32),
        'edge_allow_mask': edge_allow_mask,
        'noise_mean': jax.random.normal(ks[9], (B, D_noise), jnp.float32),
        'noise_logvar': 0.1 * jax.random.normal(ks[10], (B, D_noise), jnp.float32),
        'cl_embed_mask_1': jax.random.normal(ks[11], (B, H_cl), jnp.float32),
        'cl_embed_mask_2': jax.random.normal(ks[12], (B, H_cl), jnp.float32),
        'fp_embed': jax.random.normal(ks[13], (B, F_fp), jnp.float32),
        'fp': jax.random.randint(ks[14], (B, F_fp), 0, 2, dtype=jnp.int32).astype(jnp.float32),
    }

    grad_loss, dic_log = scaf_loss_forward(
        dic_data, loss_weight, loss_config, model_config, epoch=1000)
    jax.block_until_ready(grad_loss[0])
    assert bool(jnp.isfinite(grad_loss[0]))
    print("KERNEL_OK")
</pallas_src>

<mosaic_0001>
module attributes {stable_mosaic.version = 11 : i64} {
  func.func @_ce_clsub_tgt_kernel(%arg0: i32, %arg1: i32, %arg2: memref<1x16x9xf32, #tpu.memory_space<vmem>>, %arg3: memref<1x1x9xi32, #tpu.memory_space<vmem>>, %arg4: memref<1x1x9xf32, #tpu.memory_space<vmem>>, %arg5: memref<1x1x1xf32, #tpu.memory_space<vmem>>) attributes {dimension_semantics = [#tpu.dimension_semantics<parallel>, #tpu.dimension_semantics<arbitrary>], iteration_bounds = array<i64: 2, 1>, scalar_prefetch = 0 : i64, scratch_operands = 0 : i64, tpu.core_type = #tpu.core_type<tc>, window_params = [{transform_indices = @transform_0, window_bounds = array<i64: 1, 16, 9>}, {transform_indices = @transform_1, window_bounds = array<i64: 1, 1, 9>}, {transform_indices = @transform_2, window_bounds = array<i64: 1, 1, 9>}, {transform_indices = @transform_3, window_bounds = array<i64: 1, 1, 1>}]} {
    %c0_i32 = arith.constant 0 : i32
    %0 = arith.cmpi eq, %arg1, %c0_i32 : i32
    %1 = arith.extui %0 : i1 to i32
    %c0_i32_0 = arith.constant 0 : i32
    %2 = arith.cmpi ne, %1, %c0_i32_0 : i32
    scf.if %2 {
      %cst_21 = arith.constant 0.000000e+00 : f32
      %33 = vector.broadcast %cst_21 : f32 to vector<1x1x1xf32>
      %c0_22 = arith.constant 0 : index
      %c0_23 = arith.constant 0 : index
      %c0_24 = arith.constant 0 : index
      %34 = vector.load %arg5[%c0_22, %c0_23, %c0_24] : memref<1x1x1xf32, #tpu.memory_space<vmem>>, vector<1x1x1xf32>
      tpu.vector_store %arg5[%c0_22, %c0_23, %c0_24], %33 {strides = array<i32>} : memref<1x1x1xf32, #tpu.memory_space<vmem>>, vector<1x1x1xf32>,
    } else {
    }
    %c0 = arith.constant 0 : index
    %c0_1 = arith.constant 0 : index
    %c0_2 = arith.constant 0 : index
    %3 = vector.load %arg2[%c0, %c0_1, %c0_2] : memref<1x16x9xf32, #tpu.memory_space<vmem>>, vector<1x16x9xf32>
    %c0_3 = arith.constant 0 : index
    %c0_4 = arith.constant 0 : index
    %c0_5 = arith.constant 0 : index
    %4 = vector.load %arg3[%c0_3, %c0_4, %c0_5] : memref<1x1x9xi32, #tpu.memory_space<vmem>>, vector<1x1x9xi32>
    %c0_6 = arith.constant 0 : index
    %c0_7 = arith.constant 0 : index
    %c0_8 = arith.constant 0 : index
    %5 = vector.load %arg4[%c0_6, %c0_7, %c0_8] : memref<1x1x9xf32, #tpu.memory_space<vmem>>, vector<1x1x9xf32>
    %6 = tpu.iota {dimensions = array<i32: 1>} : vector<1x16x9xi32>
    %cst = arith.constant dense<0xFF800000> : vector<1x9xf32>
    %7 = vector.multi_reduction <maximumf>, %3, %cst [1] : vector<1x16x9xf32> to vector<1x9xf32>
    %8 = vector.shape_cast %7 : vector<1x9xf32> to vector<1x1x9xf32>
    %9 = vector.broadcast %8 : vector<1x1x9xf32> to vector<1x16x9xf32>
    %10 = arith.subf %3, %9 : vector<1x16x9xf32>
    %11 = math.exp %10 : vector<1x16x9xf32>
    %cst_9 = arith.constant dense<0.000000e+00> : vector<1x9xf32>
    %12 = vector.multi_reduction <add>, %11, %cst_9 [1] : vector<1x16x9xf32> to vector<1x9xf32>
    %13 = vector.shape_cast %12 : vector<1x9xf32> to vector<1x1x9xf32>
    %14 = math.log %13 : vector<1x1x9xf32>
    %15 = arith.addf %8, %14 : vector<1x1x9xf32>
    %16 = vector.broadcast %4 : vector<1x1x9xi32> to vector<1x16x9xi32>
    %17 = arith.cmpi eq, %6, %16 : vector<1x16x9xi32>
    %cst_10 = arith.constant 0.000000e+00 : f32
    %18 = vector.broadcast %cst_10 : f32 to vector<1x16x9xf32>
    %19 = arith.select %17, %3, %18 : vector<1x16x9xi1>, vector<1x16x9xf32>
    %cst_11 = arith.constant dense<0.000000e+00> : vector<1x9xf32>
    %20 = vector.multi_reduction <add>, %19, %cst_11 [1] : vector<1x16x9xf32> to vector<1x9xf32>
    %21 = vector.shape_cast %20 : vector<1x9xf32> to vector<1x1x9xf32>
    %22 = arith.subf %15, %21 : vector<1x1x9xf32>
    %cst_12 = arith.constant 0.000000e+00 : f32
    %23 = vector.broadcast %cst_12 : f32 to vector<1x1x9xf32>
    %24 = arith.cmpf one, %5, %23 : vector<1x1x9xf32>
    %cst_13 = arith.constant 0.000000e+00 : f32
    %25 = vector.broadcast %cst_13 : f32 to vector<1x1x9xf32>
    %26 = arith.select %24, %22, %25 : vector<1x1x9xi1>, vector<1x1x9xf32>
    %c0_14 = arith.constant 0 : index
    %c0_15 = arith.constant 0 : index
    %c0_16 = arith.constant 0 : index
    %27 = vector.load %arg5[%c0_14, %c0_15, %c0_16] : memref<1x1x1xf32, #tpu.memory_space<vmem>>, vector<1x1x1xf32>
    %28 = arith.mulf %26, %5 : vector<1x1x9xf32>
    %cst_17 = arith.constant dense<0.000000e+00> : vector<1x1xf32>
    %29 = vector.multi_reduction <add>, %28, %cst_17 [2] : vector<1x1x9xf32> to vector<1x1xf32>
    %30 = vector.shape_cast %29 : vector<1x1xf32> to vector<1x1x1xf32>
    %31 = arith.addf %27, %30 : vector<1x1x1xf32>
    %c0_18 = arith.constant 0 : index
    %c0_19 = arith.constant 0 : index
    %c0_20 = arith.constant 0 : index
    %32 = vector.load %arg5[%c0_18, %c0_19, %c0_20] : memref<1x1x1xf32, #tpu.memory_space<vmem>>, vector<1x1x1xf32>
    tpu.vector_store %arg5[%c0_18, %c0_19, %c0_20], %31 {strides = array<i32>} : memref<1x1x1xf32, #tpu.memory_space<vmem>>, vector<1x1x1xf32>,
    return
  }
  func.func @transform_0(%arg0: i32, %arg1: i32) -> (i32, i32, i32) {
    %c0_i32 = arith.constant 0 : i32
    %c0_i32_0 = arith.constant 0 : i32
    return %arg0, %c0_i32, %arg1 : i32, i32, i32
  }
  func.func @transform_1(%arg0: i32, %arg1: i32) -> (i32, i32, i32) {
    %c0_i32 = arith.constant 0 : i32
    %c0_i32_0 = arith.constant 0 : i32
    return %arg0, %c0_i32, %arg1 : i32, i32, i32
  }
  func.func @transform_2(%arg0: i32, %arg1: i32) -> (i32, i32, i32) {
    %c0_i32 = arith.constant 0 : i32
    %c0_i32_0 = arith.constant 0 : i32
    return %arg0, %c0_i32, %arg1 : i32, i32, i32
  }
  func.func @transform_3(%arg0: i32, %arg1: i32) -> (i32, i32, i32) {
    %c0_i32 = arith.constant 0 : i32
    %c0_i32_0 = arith.constant 0 : i32
    %c0_i32_1 = arith.constant 0 : i32
    return %arg0, %c0_i32, %c0_i32_0 : i32, i32, i32
  }
}

</mosaic_0001>

<bundles_post_ra>
// kernel: tpu_custom_call.1
= control target key start
LH: loop header
LB: loop body
LE: loop exit
PB: predicated region body
PF: predicated region fallthrough
CT: control target
= control target key end

     0   :  { %s482_s12 = smov 0   ;;  %s484_s13 = smov 0   ;;  %s540_s0 = inlined_call_operand.vmem [shape: f32[2,16,9], index: 0, kind: input, shape index: {}]   ;;  %s541_s1 = inlined_call_operand.vmem [shape: s32[2,1,9], index: 1, kind: input, shape index: {}]   ;;  %s542_s2 = inlined_call_operand.vmem [shape: f32[2,1,9], index: 2, kind: input, shape index: {}]   ;;  %s543_s3 = inlined_call_operand.vmem [shape: f32[2,1,1], index: 3, kind: output, shape index: {}]  }
   0x1   :  { %s486_s14 = smov 0  }
   0x2 LB: > { %s25_s15 = sadd.s32 1, %s455_s13  ;;  %p399_p0 = scmp.ge.s32.totalorder %s459_s14, 1  ;;  %s459_s14 = sphi %s486_s14, %s13_s14   ;;  %s455_s13 = sphi %s484_s13, %s545_s13   ;;  %s451_s12 = sphi %s482_s12, %s544_s12  }
   0x3   : > { %p27_p1 = scmp.ge.s32.totalorder %s25_s15, 2  ;;  %p180_p2 = scmp.lt.s32.totalorder %s459_s14, 3 }
   0x5   : > { %s547_s15 = smov (%p27_p1, %s25_s15), 0  ;;  %p181_p3 = pnand %p399_p0, %p180_p2 }
   0x6   : > { %p217_p4 = scmp.lt.s32.totalorder (!%p181_p3), %s451_s12, 1  ;;  %vm253_vm0 = vcmask (!%p181_p3), 72704   ;;  %vm244_vm1 = vcmask (!%p181_p3), 0   ;;  %v461_v4 = vmov (!%p181_p3), 0.0   ;;  %v250_v11 = vlaneseq (!%p181_p3) }
   0x7   : > { %184 = sbr.rel (%p181_p3) target bundleno = 230 (0xe6), region = 32  ;;  %vm303_vm5 = vcmask (!%p181_p3), 65536  }
   0x8   : > { %v251_v15 = vshrl.u32 (!%p181_p3), %v250_v11, 7 }
   0xa   : > { %v252_v18 = vadd.s32 (!%p181_p3), 8, %v251_v15 }
   0xe   : > { %s549_s12 = smov (!%p217_p4, %s451_s12), 1 }
   0xf   : > { %s405_s16 = sshll.u32 %s549_s12, 4  ;;  %s510_s22 = scalar_lea.vmem %s543_s3, %s549_s12 }
  0x10   : > { %s224_s19 = scalar_lea.vmem %s540_s0, %s405_s16  ;;  %245 = vst.msk [vmem:[%s510_s22] sm:$0x1] %vm244_vm1, %v461_v4  ;;  %s230_s25 = scalar_lea.vmem %s541_s1, %s549_s12 }
  0x11   : > { %v246_v0 = vld [vmem:[%s224_s19] sm:$0xff]  ;;  %v247_v1 = vld [vmem:[%s224_s19 + $0x8] sm:$0xff]  ;;  %s236_s28 = scalar_lea.vmem %s542_s2, %s549_s12 }
  0x12   : > { %v254_v2 = vsel %vm253_vm0, %v246_v0, -inf  ;;  %v255_v3 = vsel %vm253_vm0, %v247_v1, -inf  ;;  %v402_v19 = vld [vmem:[%s230_s25] ss:$0 sm:$0xff] }
  0x13   : > { %v256_v5 = vmax.f32 %v254_v2, %v255_v3  ;;  %vm285_vm2 = vcmp.eq.s32.totalorder %v251_v15, %v402_v19  ;;  %vm286_vm3 = vcmp.eq.s32.totalorder %v252_v18, %v402_v19  ;;  %v249_v42 = vld [vmem:[%s236_s28] sm:$0x1] }
  0x14   : > { %v287_v20 = vsel %vm285_vm2, %v246_v0, 0.0  ;;  %v288_v21 = vsel %vm286_vm3, %v247_v1, 0.0  ;;  %vm299_vm4 = vcmp.ne.f32.partialorder %v249_v42, 0.0 }
  0x15   : > { %v257_v6 = vrot.slane %v256_v5, 4  ;;  %v289_v25 = vsel %vm253_vm0, %v287_v20, 0.0  ;;  %v290_v26 = vsel %vm253_vm0, %v288_v21, 0.0 }
  0x16   : > { %v291_v29 = vadd.f32 %v290_v26, %v289_v25 }
  0x17   : > { %v258_v7 = vmax.f32 %v256_v5, %v257_v6  ;;  %v301_v50 = vld [vmem:[%s510_s22] sm:$0x1] }
  0x18   : > { %v292_v32 = vrot.slane %v291_v29, 4 }
  0x19   : > { %v259_v8 = vrot.slane %v258_v7, 2 }
  0x1a   : > { %v293_v35 = vadd.f32 %v292_v32, %v291_v29 }
  0x1b   : > { %v260_v9 = vmax.f32 %v258_v7, %v259_v8 }
  0x1c   : > { %v294_v38 = vrot.slane %v293_v35, 2 }
  0x1d   : > { %v261_v10 = vrot.slane %v260_v9, 1 }
  0x1e   : > { %v295_v39 = vadd.f32 %v294_v38, %v293_v35 }
  0x1f   : > { %v262_v12 = vmax.f32 %v260_v9, %v261_v10 }
  0x20   : > { %v296_v40 = vrot.slane %v295_v39, 1 }
  0x21   : > { %v263_v13 = vsub.f32 %v246_v0, %v262_v12  ;;  %v264_v14 = vsub.f32 %v247_v1, %v262_v12 }
  0x22   : > { %v297_v44 = vadd.f32 %v296_v40, %v295_v39 }
  0x23   : > { %v265_v16 = vmul.f32 1.442695, %v263_v13  ;;  %v267_v17 = vmul.f32 1.442695, %v264_v14 }
  0x25   : > { %431 = vpow2.f32 %v265_v16 }
  0x26   : > { %433 = vpow2.f32 %v267_v17 }
  0x2f   : > { %v432_v22 = vpop.eup %431 }
  0x30   : > { %v434_v23 = vpop.eup %433  ;;  %v269_v24 = vsel %vm253_vm0, %v432_v22, 0.0 }
  0x31   : > { %v270_v27 = vsel %vm253_vm0, %v434_v23, 0.0 }
  0x32   : > { %v271_v28 = vadd.f32 %v270_v27, %v269_v24 }
  0x34   : > { %v272_v30 = vrot.slane %v271_v28, 4 }
  0x36   : > { %v273_v31 = vadd.f32 %v272_v30, %v271_v28 }
  0x38   : > { %v274_v33 = vrot.slane %v273_v31, 2 }
  0x3a   : > { %v275_v34 = vadd.f32 %v274_v33, %v273_v31 }
  0x3c   : > { %v276_v36 = vrot.slane %v275_v34, 1 }
  0x3e   : > { %v277_v37 = vadd.f32 %v276_v36, %v275_v34 }
  0x40   : > { %435 = vlog2.f32 %v277_v37 }
  0x4a   : > { %v436_v41 = vpop.eup %435 }
  0x4b   : > { %v279_v43 = vmul.f32 0.6931472, %v436_v41 }
  0x4d   : > { %v280_v45 = vadd.f32 %v279_v43, %v262_v12 }
  0x4f   : > { %v298_v46 = vsub.f32 %v280_v45, %v297_v44 }
  0x51   : > { %v300_v47 = vsel %vm299_vm4, %v298_v46, 0.0 }
  0x52   : > { %v302_v48 = vmul.f32 %v300_v47, %v249_v42 }
  0x54   : > { %v304_v49 = vsel %vm303_vm5, %v302_v48, 0.0 }
  0x55   : > { %305 = vadd.xlane.f32.xlu0 %v304_v49 }
  0xe2   : > { %v306_v51 = vpop.xlane.xlu0 %305 }
  0xe3   : > { %v307_v52 = vadd.f32 %v306_v51, %v301_v50 }
  0xe5   : > { %309 = vst.msk [vmem:[%s510_s22] sm:$0x1] %vm244_vm1, %v307_v52 }
  0xe6 PF: > { %s13_s14 = sadd.s32 1, %s459_s14   ;;  %s544_s12 = smov %s455_s13 }
  0xe7   : > { %p10_p5 = scmp.ge.s32.totalorder %s13_s14, 4   ;;  %s545_s13 = smov %s547_s15 }
  0xe9   :  { %12 = sbr.rel (!%p10_p5) target bundleno = 2 (0x2), region = 72 }

</bundles_post_ra>
